<compile_context>
chip_gen: v7x
topology: tpu7x:2x2x1
jax: 0.10.0
libtpu: 0.0.40
codegen_flags: <defaults>
</compile_context>

<pallas_src>
import jax
import jax.numpy as jnp
from jax.experimental import pallas as pl
from jax.experimental.pallas import tpu as pltpu


# ---------------------------------------------------------------------------
# Fused Pallas kernel: emb lookup + A_hat build + GCN layers + readout
# ---------------------------------------------------------------------------

def _psinet_fused_kernel(x_idx_ref, edge_ref, emb_ref, w_ref, bias_ref,
                         ro_w_ref, logits_ref):
    # x_idx_ref : [N, 1]      int32  node vocabulary indices
    # edge_ref  : [2, E]      int32  edge_index_01 (row 0 = src, row 1 = dst)
    # emb_ref   : [V, H]      f32    embedding table
    # w_ref     : [L, H, H]   bf16   stacked GCN layer weights
    # bias_ref  : [L+1, H]    f32    rows 0..L-1: GCN biases; row L[:C]: readout bias
    # ro_w_ref  : [H, C]      bf16   readout linear weight
    # logits_ref: [1, C]      f32    graph-level logits
    n = x_idx_ref.shape[0]
    vocab = emb_ref.shape[0]
    e = edge_ref.shape[1]
    num_layers = w_ref.shape[0]
    num_classes = logits_ref.shape[1]
    f32 = jnp.float32

    # --- Embedding lookup as one-hot matmul (exact row select, rides the MXU) ---
    node_ids = x_idx_ref[...]                                          # (N, 1)
    vocab_iota = jax.lax.broadcasted_iota(jnp.int32, (n, vocab), 1)
    emb_onehot = (vocab_iota == node_ids).astype(f32)                  # (N, V)
    h = jnp.dot(emb_onehot, emb_ref[...], preferred_element_type=f32)  # (N, H)

    # --- Adjacency A[dst, src] += 1 (scatter-add via one-hot @ one-hot^T) + I ---
    # NOTE: unconditional +I double-weights pre-existing self-loops relative to
    # PyG's add_remaining_self_loops; consistent with the pure-JAX reference.
    edges = edge_ref[...]                                              # (2, E)
    src = edges[0:1, :]                                                # (1, E)
    dst = edges[1:2, :]                                                # (1, E)
    node_iota = jax.lax.broadcasted_iota(jnp.int32, (n, e), 0)
    dst_oh = (node_iota == dst).astype(f32)                            # (N, E)
    src_oh = (node_iota == src).astype(f32)                            # (N, E)
    adj = jnp.dot(dst_oh, src_oh.T, preferred_element_type=f32)        # (N, N)
    row_i = jax.lax.broadcasted_iota(jnp.int32, (n, n), 0)
    col_i = jax.lax.broadcasted_iota(jnp.int32, (n, n), 1)
    adj = adj + (row_i == col_i).astype(f32)                           # + I

    # --- GCN normalization: keep A in f32, apply D^-1/2 as a row-scale sandwich ---
    deg = jnp.sum(adj, axis=1, keepdims=True)                          # (N, 1)
    d_inv_sqrt = jax.lax.rsqrt(jnp.maximum(deg, 1.0))                  # (N, 1)

    bias = bias_ref[...]                                               # (L+1, H)

    # --- GCN layers: h <- relu((D^-1/2 A D^-1/2 h) @ W + b) ---
    for layer in range(num_layers):
        hs = d_inv_sqrt * h                                            # D^-1/2 h
        m = jnp.dot(adj, hs, preferred_element_type=f32)               # A @ ...
        m = d_inv_sqrt * m                                             # D^-1/2 ...
        m = jnp.dot(m.astype(jnp.bfloat16), w_ref[layer],              # bf16 in,
                    preferred_element_type=f32)                        # f32 acc
        m = m + bias[layer:layer + 1, :]
        h = jnp.maximum(m, 0.0)                                        # relu, f32

    # --- Readout (use_decoder=False): global mean pool + linear head ---
    z = jnp.sum(h, axis=0, keepdims=True) * (1.0 / n)                  # (1, H) f32
    logits = jnp.dot(z.astype(jnp.bfloat16), ro_w_ref[...],
                     preferred_element_type=f32)
    logits = logits + bias[num_layers:num_layers + 1, 0:num_classes]   # ro_b
    logits_ref[...] = logits


def psinet_fused(x_idx_2d, edge_index, emb, w_all, bias_all, ro_w, num_classes):
    vmem = lambda: pl.BlockSpec(memory_space=pltpu.MemorySpace.VMEM)
    return pl.pallas_call(
        _psinet_fused_kernel,
        out_shape=jax.ShapeDtypeStruct((1, num_classes), jnp.float32),
        in_specs=[vmem() for _ in range(6)],
        out_specs=vmem(),
    )(x_idx_2d, edge_index, emb, w_all, bias_all, ro_w)


# ---------------------------------------------------------------------------
# Forward wrapper (matches PSINet.forward return signature for this config)
# ---------------------------------------------------------------------------

def psinet_forward(params, x_idx, edge_index_01, num_classes):
    x_idx_2d = x_idx.reshape(-1, 1).astype(jnp.int32)
    logits_g = psinet_fused(x_idx_2d, edge_index_01.astype(jnp.int32),
                            params["emb"], params["w_all"], params["bias_all"],
                            params["ro_w"], num_classes)
    # eval mode + subgraph_infomax_type=None + use_decoder=False:
    dec_x, dec_e, loss_isi = None, None, None
    return logits_g, dec_x, dec_e, loss_isi


# ---------------------------------------------------------------------------
# Pure-JAX reference (same bf16-rounded weights, f32 math) for sanity check
# ---------------------------------------------------------------------------

def psinet_reference(params, x_idx, edge_index_01, num_classes):
    num_layers = params["w_all"].shape[0]
    h = jnp.take(params["emb"], x_idx, axis=0)
    n = h.shape[0]
    src, dst = edge_index_01[0], edge_index_01[1]
    a = jnp.zeros((n, n), jnp.float32).at[dst, src].add(1.0)
    a = a + jnp.eye(n, dtype=jnp.float32)
    deg = jnp.sum(a, axis=1)
    d = jax.lax.rsqrt(jnp.maximum(deg, 1.0))
    a_hat = a * d[:, None] * d[None, :]
    for l in range(num_layers):
        h = a_hat @ h
        h = h @ params["w_all"][l].astype(jnp.float32) \
            + params["bias_all"][l][None, :]
        h = jnp.maximum(h, 0.0)
    z = jnp.mean(h, axis=0, keepdims=True)
    ro_b = params["bias_all"][num_layers:num_layers + 1, :num_classes]
    logits = z @ params["ro_w"].astype(jnp.float32) + ro_b
    return logits


# ---------------------------------------------------------------------------
# Deterministic parameter init (unpadded shapes) + example run
# ---------------------------------------------------------------------------

def init_params(key, vocab, hidden, num_layers, num_classes):
    keys = jax.random.split(key, num_layers + 4)
    emb = 0.1 * jax.random.normal(keys[0], (vocab, hidden), jnp.float32)
    w_all = jnp.stack([
        0.1 * jax.random.normal(keys[1 + l], (hidden, hidden), jnp.float32)
        for l in range(num_layers)])
    ro_w = 0.1 * jax.random.normal(keys[num_layers + 1], (hidden, num_classes),
                                   jnp.float32)
    b_all = 0.01 * jax.random.normal(keys[num_layers + 2], (num_layers, hidden),
                                     jnp.float32)
    ro_b = 0.01 * jax.random.normal(keys[num_layers + 3], (num_classes,),
                                    jnp.float32)
    # Pack GCN biases + readout bias into one buffer (fewer kernel inputs).
    bias_all = jnp.zeros((num_layers + 1, hidden), jnp.float32)
    bias_all = bias_all.at[:num_layers].set(b_all)
    bias_all = bias_all.at[num_layers, :num_classes].set(ro_b)
    return {
        "emb": emb,                              # f32
        "w_all": w_all.astype(jnp.bfloat16),     # bf16 MXU operands
        "bias_all": bias_all,                    # f32 packed biases
        "ro_w": ro_w.astype(jnp.bfloat16),       # bf16 MXU operand
    }


if __name__ == "__main__":
    key = jax.random.PRNGKey(0)
    k_idx, k_edge, k_params = jax.random.split(key, 3)

    N = 16           # nodes in the subgraph
    VOCAB = 50       # global node vocabulary (embedding rows)
    HIDDEN = 32      # args.hidden_channels (unpadded)
    LAYERS = 2       # args.num_layers in GraphEncoder
    CLASSES = 8      # graph-level logits (unpadded)
    E = 40           # number of edges

    x_idx = jax.random.randint(k_idx, (N,), 0, VOCAB, dtype=jnp.int32)
    edge_index_01 = jax.random.randint(k_edge, (2, E), 0, N, dtype=jnp.int32)

    params = init_params(k_params, VOCAB, HIDDEN, LAYERS, CLASSES)

    logits_g, dec_x, dec_e, loss_isi = psinet_forward(
        params, x_idx, edge_index_01, CLASSES)
    logits_g = jax.block_until_ready(logits_g)

    assert logits_g.shape == (1, CLASSES)
    assert dec_x is None and dec_e is None and loss_isi is None

    ref = psinet_reference(params, x_idx, edge_index_01, CLASSES)
    assert jnp.allclose(logits_g, ref, atol=5e-2, rtol=1e-1), (logits_g, ref)

    print("KERNEL_OK")
</pallas_src>

<mosaic_0001>
module attributes {stable_mosaic.version = 11 : i64} {
  func.func @_psinet_fused_kernel(%arg0: memref<16x1xi32, #tpu.memory_space<vmem>>, %arg1: memref<2x40xi32, #tpu.memory_space<vmem>>, %arg2: memref<50x32xf32, #tpu.memory_space<vmem>>, %arg3: memref<2x32x32xbf16, #tpu.memory_space<vmem>>, %arg4: memref<3x32xf32, #tpu.memory_space<vmem>>, %arg5: memref<32x8xbf16, #tpu.memory_space<vmem>>, %arg6: memref<1x8xf32, #tpu.memory_space<vmem>>) attributes {dimension_semantics = [], scalar_prefetch = 0 : i64, scratch_operands = 0 : i64, tpu.core_type = #tpu.core_type<tc>} {
    %c0 = arith.constant 0 : index
    %c0_0 = arith.constant 0 : index
    %0 = vector.load %arg0[%c0, %c0_0] : memref<16x1xi32, #tpu.memory_space<vmem>>, vector<16x1xi32>
    %1 = tpu.iota {dimensions = array<i32: 1>} : vector<16x50xi32>
    %2 = vector.broadcast %0 : vector<16x1xi32> to vector<16x50xi32>
    %3 = arith.cmpi eq, %1, %2 : vector<16x50xi32>
    %4 = arith.extui %3 : vector<16x50xi1> to vector<16x50xi32>
    %5 = arith.sitofp %4 : vector<16x50xi32> to vector<16x50xf32>
    %c0_1 = arith.constant 0 : index
    %c0_2 = arith.constant 0 : index
    %6 = vector.load %arg2[%c0_1, %c0_2] : memref<50x32xf32, #tpu.memory_space<vmem>>, vector<50x32xf32>
    %cst = arith.constant dense<0.000000e+00> : vector<16x32xf32>
    %7 = tpu.matmul %5, %6, %cst {dimension_numbers = #tpu.dot_dimension_numbers<[1], [0], [0], [1], [0, 0, 1, 1], [], []>} : vector<16x50xf32>, vector<50x32xf32>, vector<16x32xf32> -> vector<16x32xf32>
    %c0_3 = arith.constant 0 : index
    %c0_4 = arith.constant 0 : index
    %8 = vector.load %arg1[%c0_3, %c0_4] : memref<2x40xi32, #tpu.memory_space<vmem>>, vector<2x40xi32>
    %9 = vector.extract_strided_slice %8 {offsets = [0, 0], sizes = [1, 40], strides = [1, 1]} : vector<2x40xi32> to vector<1x40xi32>
    %10 = vector.extract_strided_slice %8 {offsets = [1, 0], sizes = [1, 40], strides = [1, 1]} : vector<2x40xi32> to vector<1x40xi32>
    %11 = tpu.iota {dimensions = array<i32: 0>} : vector<16x40xi32>
    %12 = vector.broadcast %10 : vector<1x40xi32> to vector<16x40xi32>
    %13 = arith.cmpi eq, %11, %12 : vector<16x40xi32>
    %14 = arith.extui %13 : vector<16x40xi1> to vector<16x40xi32>
    %15 = arith.sitofp %14 : vector<16x40xi32> to vector<16x40xf32>
    %16 = vector.broadcast %9 : vector<1x40xi32> to vector<16x40xi32>
    %17 = arith.cmpi eq, %11, %16 : vector<16x40xi32>
    %18 = arith.extui %17 : vector<16x40xi1> to vector<16x40xi32>
    %19 = arith.sitofp %18 : vector<16x40xi32> to vector<16x40xf32>
    %20 = tpu.transpose %19, [1, 0] : vector<16x40xf32> -> vector<40x16xf32>
    %cst_5 = arith.constant dense<0.000000e+00> : vector<16x16xf32>
    %21 = tpu.matmul %15, %20, %cst_5 {dimension_numbers = #tpu.dot_dimension_numbers<[1], [0], [0], [1], [0, 0, 1, 1], [], []>} : vector<16x40xf32>, vector<40x16xf32>, vector<16x16xf32> -> vector<16x16xf32>
    %22 = tpu.iota {dimensions = array<i32: 0>} : vector<16x16xi32>
    %23 = tpu.iota {dimensions = array<i32: 1>} : vector<16x16xi32>
    %24 = arith.cmpi eq, %22, %23 : vector<16x16xi32>
    %25 = arith.extui %24 : vector<16x16xi1> to vector<16x16xi32>
    %26 = arith.sitofp %25 : vector<16x16xi32> to vector<16x16xf32>
    %27 = arith.addf %21, %26 : vector<16x16xf32>
    %cst_6 = arith.constant dense<0.000000e+00> : vector<16xf32>
    %28 = vector.multi_reduction <add>, %27, %cst_6 [1] : vector<16x16xf32> to vector<16xf32>
    %29 = vector.shape_cast %28 : vector<16xf32> to vector<16x1xf32>
    %cst_7 = arith.constant 1.000000e+00 : f32
    %30 = vector.broadcast %cst_7 : f32 to vector<16x1xf32>
    %31 = arith.maximumf %29, %30 : vector<16x1xf32>
    %32 = math.rsqrt %31 : vector<16x1xf32>
    %c0_8 = arith.constant 0 : index
    %c0_9 = arith.constant 0 : index
    %33 = vector.load %arg4[%c0_8, %c0_9] : memref<3x32xf32, #tpu.memory_space<vmem>>, vector<3x32xf32>
    %34 = vector.broadcast %32 : vector<16x1xf32> to vector<16x32xf32>
    %35 = arith.mulf %34, %7 : vector<16x32xf32>
    %cst_10 = arith.constant dense<0.000000e+00> : vector<16x32xf32>
    %36 = tpu.matmul %27, %35, %cst_10 {dimension_numbers = #tpu.dot_dimension_numbers<[1], [0], [0], [1], [0, 0, 1, 1], [], []>} : vector<16x16xf32>, vector<16x32xf32>, vector<16x32xf32> -> vector<16x32xf32>
    %37 = vector.broadcast %32 : vector<16x1xf32> to vector<16x32xf32>
    %38 = arith.mulf %37, %36 : vector<16x32xf32>
    %39 = arith.truncf %38 : vector<16x32xf32> to vector<16x32xbf16>
    %c0_11 = arith.constant 0 : index
    %c0_12 = arith.constant 0 : index
    %c0_13 = arith.constant 0 : index
    %40 = vector.load %arg3[%c0_11, %c0_12, %c0_13] : memref<2x32x32xbf16, #tpu.memory_space<vmem>>, vector<1x32x32xbf16>
    %41 = vector.shape_cast %40 : vector<1x32x32xbf16> to vector<32x32xbf16>
    %cst_14 = arith.constant dense<0.000000e+00> : vector<16x32xf32>
    %42 = tpu.matmul %39, %41, %cst_14 {dimension_numbers = #tpu.dot_dimension_numbers<[1], [0], [0], [1], [0, 0, 1, 1], [], []>} : vector<16x32xbf16>, vector<32x32xbf16>, vector<16x32xf32> -> vector<16x32xf32>
    %43 = vector.extract_strided_slice %33 {offsets = [0, 0], sizes = [1, 32], strides = [1, 1]} : vector<3x32xf32> to vector<1x32xf32>
    %44 = vector.broadcast %43 : vector<1x32xf32> to vector<16x32xf32>
    %45 = arith.addf %42, %44 : vector<16x32xf32>
    %cst_15 = arith.constant 0.000000e+00 : f32
    %46 = vector.broadcast %cst_15 : f32 to vector<16x32xf32>
    %47 = arith.maximumf %45, %46 : vector<16x32xf32>
    %48 = vector.broadcast %32 : vector<16x1xf32> to vector<16x32xf32>
    %49 = arith.mulf %48, %47 : vector<16x32xf32>
    %cst_16 = arith.constant dense<0.000000e+00> : vector<16x32xf32>
    %50 = tpu.matmul %27, %49, %cst_16 {dimension_numbers = #tpu.dot_dimension_numbers<[1], [0], [0], [1], [0, 0, 1, 1], [], []>} : vector<16x16xf32>, vector<16x32xf32>, vector<16x32xf32> -> vector<16x32xf32>
    %51 = vector.broadcast %32 : vector<16x1xf32> to vector<16x32xf32>
    %52 = arith.mulf %51, %50 : vector<16x32xf32>
    %53 = arith.truncf %52 : vector<16x32xf32> to vector<16x32xbf16>
    %c1 = arith.constant 1 : index
    %c0_17 = arith.constant 0 : index
    %c0_18 = arith.constant 0 : index
    %54 = vector.load %arg3[%c1, %c0_17, %c0_18] : memref<2x32x32xbf16, #tpu.memory_space<vmem>>, vector<1x32x32xbf16>
    %55 = vector.shape_cast %54 : vector<1x32x32xbf16> to vector<32x32xbf16>
    %cst_19 = arith.constant dense<0.000000e+00> : vector<16x32xf32>
    %56 = tpu.matmul %53, %55, %cst_19 {dimension_numbers = #tpu.dot_dimension_numbers<[1], [0], [0], [1], [0, 0, 1, 1], [], []>} : vector<16x32xbf16>, vector<32x32xbf16>, vector<16x32xf32> -> vector<16x32xf32>
    %57 = vector.extract_strided_slice %33 {offsets = [1, 0], sizes = [1, 32], strides = [1, 1]} : vector<3x32xf32> to vector<1x32xf32>
    %58 = vector.broadcast %57 : vector<1x32xf32> to vector<16x32xf32>
    %59 = arith.addf %56, %58 : vector<16x32xf32>
    %cst_20 = arith.constant 0.000000e+00 : f32
    %60 = vector.broadcast %cst_20 : f32 to vector<16x32xf32>
    %61 = arith.maximumf %59, %60 : vector<16x32xf32>
    %cst_21 = arith.constant dense<0.000000e+00> : vector<32xf32>
    %62 = vector.multi_reduction <add>, %61, %cst_21 [0] : vector<16x32xf32> to vector<32xf32>
    %63 = vector.shape_cast %62 : vector<32xf32> to vector<1x32xf32>
    %cst_22 = arith.constant 6.250000e-02 : f32
    %64 = vector.broadcast %cst_22 : f32 to vector<1x32xf32>
    %65 = arith.mulf %63, %64 : vector<1x32xf32>
    %66 = arith.truncf %65 : vector<1x32xf32> to vector<1x32xbf16>
    %c0_23 = arith.constant 0 : index
    %c0_24 = arith.constant 0 : index
    %67 = vector.load %arg5[%c0_23, %c0_24] : memref<32x8xbf16, #tpu.memory_space<vmem>>, vector<32x8xbf16>
    %cst_25 = arith.constant dense<0.000000e+00> : vector<1x8xf32>
    %68 = tpu.matmul %66, %67, %cst_25 {dimension_numbers = #tpu.dot_dimension_numbers<[1], [0], [0], [1], [0, 0, 1, 1], [], []>} : vector<1x32xbf16>, vector<32x8xbf16>, vector<1x8xf32> -> vector<1x8xf32>
    %69 = vector.extract_strided_slice %33 {offsets = [2, 0], sizes = [1, 8], strides = [1, 1]} : vector<3x32xf32> to vector<1x8xf32>
    %70 = arith.addf %68, %69 : vector<1x8xf32>
    %c0_26 = arith.constant 0 : index
    %c0_27 = arith.constant 0 : index
    %71 = vector.load %arg6[%c0_26, %c0_27] : memref<1x8xf32, #tpu.memory_space<vmem>>, vector<1x8xf32>
    tpu.vector_store %arg6[%c0_26, %c0_27], %70 {strides = array<i32>} : memref<1x8xf32, #tpu.memory_space<vmem>>, vector<1x8xf32>,
    return
  }
}

</mosaic_0001>

<bundles_post_ra>
// kernel: tpu_custom_call.1
= control target key start
LH: loop header
LB: loop body
LE: loop exit
PB: predicated region body
PF: predicated region fallthrough
CT: control target
= control target key end

     0   :  { %v27_v0 = vlaneseq  ;;  %v842_v3 = vmov 0   ;;  %vm164_vm0 = vcmask 326656   ;;  %v843_v21 = vmov 0.0   ;;  %s1003_s0 = inlined_call_operand.vmem [shape: s32[16,1], index: 0, kind: input, shape index: {}]   ;;  %s1004_s1 = inlined_call_operand.vmem [shape: s32[2,40], index: 1, kind: input, shape index: {}]   ;;  %s1005_s2 = inlined_call_operand.vmem [shape: f32[50,32], index: 2, kind: input, shape index: {}]   ;;  %s1006_s3 = inlined_call_operand.vmem [shape: bf16[2,32,32], index: 3, kind: input, shape index: {}]   ;;  %s1007_s4 = inlined_call_operand.vmem [shape: f32[3,32], index: 4, kind: input, shape index: {}]   ;;  %s1008_s5 = inlined_call_operand.vmem [shape: bf16[32,8], index: 5, kind: input, shape index: {}]   ;;  %s1009_s6 = inlined_call_operand.hbm [shape: f32[1,8], index: 6, kind: output, shape index: {}]  }
   0x1   :  { %v25_v1 = vld [vmem:[%s1003_s0] sm:$0xff]  ;;  %807 = vset.pattern.permute.xlu0 %v842_v3  ;;  %v42_v6 = vld [vmem:[%s1005_s2 + $0x8] sm:$0xff]  ;;  %v43_v7 = vld [vmem:[%s1005_s2 + $0x10] sm:$0xff] }
   0x2   :  { %v134_v2 = vld [vmem:[%s1004_s1] sm:$0x3]  ;;  %v890_v5 = vshrl.u32 %v27_v0, 7  ;;  %30 = vperm.xlu0 %807, %v25_v1   ;;  %v44_v8 = vld [vmem:[%s1005_s2 + $0x18] sm:$0xff]  ;;  %v26_v9 = vld [vmem:[%s1003_s0 + $0x8] sm:$0xff] }
   0x3   :  { %v41_v4 = vld [vmem:[%s1005_s2] sm:$0xff]  ;;  %v781_v11 = vpack.c.bf16 %v44_v8, %v43_v7  ;;  %v46_v16 = vld [vmem:[%s1005_s2 + $0x28] sm:$0xff]  ;;  %vm919_vm1 = vmpackc.low %vm164_vm0, %vm164_vm0 }
   0x4   :  { %v777_v10 = vpack.c.bf16 %v42_v6, %v41_v4  ;;  %v45_v12 = vld [vmem:[%s1005_s2 + $0x20] sm:$0xff]  ;;  %v137_v13 = vadd.s32 8, %v890_v5  ;;  %v150_v14 = vsub.s32 0, %v890_v5  ;;  %v140_v15 = vsub.s32 1, %v890_v5 }
   0x5   :  { %v785_v20 = vpack.c.bf16 %v46_v16, %v45_v12 }
   0x6   :  { %778 = vmatprep.subr.bf16.mxu0 %v777_v10  ;;  %v151_v17 = vrot.slane %v134_v2, %v150_v14  ;;  %v141_v18 = vrot.slane %v134_v2, %v140_v15  ;;  %33 = vperm.xlu0 %807, %v26_v9  }
   0x7   :  { %780 = vmatpush3.bf16.msra.mxu0 %v777_v10 }
   0x8   :  { %782 = vmatprep.subr.bf16.mxu0 %v781_v11  ;;  %vm152_vm2 = vcmp.eq.s32.totalorder %v890_v5, %v151_v17  ;;  %vm153_vm3 = vcmp.eq.s32.totalorder %v137_v13, %v151_v17  ;;  %vm142_vm4 = vcmp.eq.s32.totalorder %v890_v5, %v141_v18 }
   0x9   :  { %v660_v22 = vsel %vm152_vm2, 1.0, %v843_v21  ;;  %v661_v23 = vsel %vm153_vm3, 1.0, %v843_v21  ;;  %v658_v24 = vsel %vm142_vm4, 1.0, %v843_v21 }
   0xa   :  { %11 = vsyncpa [#allocation3], 0  ;;  %v789_v25 = vpack.c.bf16 %v661_v23, %v660_v22  ;;  %736 = vmatprep.mubr.msk.f32.mxu1 %vm164_vm0, %v658_v24  ;;  %v47_v26 = vld [vmem:[%s1005_s2 + $0x30] sm:$0x3]  ;;  %vm55_vm5 = vcmask 1041408   ;;  %vm143_vm6 = vcmp.eq.s32.totalorder %v137_v13, %v141_v18  ;;  %v28_v28 = vand.u32 127, %v27_v0 }
   0xb   :  { %784 = vmatpush3.bf16.msra.mxu0 %v781_v11  ;;  %v659_v27 = vsel %vm143_vm6, 1.0, %v843_v21  ;;  %vm48_vm7 = vcmask 408576   ;;  %vm252_vm12 = vcmask 130048   ;;  %v808_v52 = vld [vmem:[%s1006_s3] sm:$0xff]   ;;  %v809_v53 = vld [vmem:[%s1006_s3 + $0x8] sm:$0xff]   ;;  %vm844_vm13 = vmmov 0  }
   0xc   :  { %786 = vmatprep.subr.bf16.mxu0 %v785_v20  ;;  %791 = vmatprep.subr.msk.bf16.mxu1 %vm919_vm1, %v789_v25  ;;  %vm159_vm10 = vcmp.eq.s32.totalorder %v137_v13, %v28_v28  ;;  %vm158_vm11 = vcmp.eq.s32.totalorder %v890_v5, %v28_v28  ;;  %vm370_vm14 = vcmask 261120   ;;  %v263_v59 = vld [vmem:[%s1007_s4] sm:$0x7]  ;;  %v810_v9 = vld [vmem:[%s1006_s3 + $0x10] sm:$0xff]   ;;  %v811_v10 = vld [vmem:[%s1006_s3 + $0x18] sm:$0xff]   ;;  %s845_s3 = smov [#allocation2]  }
   0xd   :  { %794 = vmatpush3.bf16.xpose.msk.msra.mxu1 %vm919_vm1, %v789_v25  ;;  %v663_v33 = vsel %vm159_vm10, 1.0, %v843_v21  ;;  %v662_v34 = vsel %vm158_vm11, 1.0, %v843_v21  ;;  %v357_v60 = vrot.slane %v263_v59, %v150_v14  ;;  %v812_v17 = vld [vmem:[%s1008_s5] sm:$0xff]   ;;  %v813_v18 = vld [vmem:[%s1008_s5 + $0x8] sm:$0xff]   ;;  %v505_v19 = vrot.slane %v263_v59, %v140_v15  ;;  %s645_s5 = sshll.u32 %s845_s3, 4  ;;  %s646_s5 = int_to_ptr.vmem [resolvable:$true] %s645_s5 }
   0xe   :  { %vm637_vm15 = vcmask 57344   ;;  %s818_s27 = scalar_lea.vmem %s646_s5, 16  ;;  %s822_s28 = scalar_lea.vmem %s646_s5, 32 }
   0xf   :  { %788 = vmatpush3.bf16.msra.mxu0 %v785_v20  ;;  %p819_p0 = scmp.ne.s32.totalorder %s646_s5, %s818_s27  ;;  %p823_p1 = scmp.lt.s32.totalorder %s646_s5, %s646_s5 }
  0x10   :  { %727 = vmatprep.subr.msk.mxu0 %vm55_vm5, %v47_v26  ;;  %p824_p2 = scmp.lt.s32.totalorder %s822_s28, %s818_s27 }
  0x12   :  { %p825_p3 = por %p824_p2, %p823_p1 }
  0x13   :  { %728 = vmatpush3.msk.msra.mxu0 %vm55_vm5, %v47_v26 }
  0x14   :  { %737 = vmatmul.mubr.msk.f32.vlgmr.msra.gmra.mrb[0].mxu1 %vm164_vm0, %v659_v27  ;;  %p826_p4 = pnand %p825_p3, %p819_p0 }
  0x81   :  { %v31_v29 = vpop.permute.xlu0 %30 }
  0x82   :  { %vm35_vm8 = vcmp.eq.s32.totalorder %v28_v28, %v31_v29 }
  0x83   :  { %v653_v30 = vsel %vm35_vm8, 1.0, %v843_v21 }
  0x84   :  { %729 = vmatprep.mubr.msk.f32.mxu0 %vm48_vm7, %v653_v30 }
  0x85   :  { %v34_v31 = vpop.permute.xlu0 %33 }
  0x86   :  { %vm36_vm9 = vcmp.eq.s32.totalorder %v28_v28, %v34_v31 }
  0x87   :  { %v654_v32 = vsel %vm36_vm9, 1.0, %v843_v21 }
  0x88   :  { %730 = vmatmul.mubr.msk.f32.vlgmr.msra.gmra.mrb[0].mxu0 %vm48_vm7, %v654_v32 }
  0xe7   :  { %v738_v35 = vpop.f32.mrb[0].mxu1 }
  0xe8   :  { %v249_v36 = vadd.f32 %v738_v35, %v663_v33  ;;  %v243_v37 = vpop.f32.mrb[1].mxu1 }
  0xe9   :  { %v244_v38 = vadd.f32 %v662_v34, %v243_v37  ;;  %v592_v37 = vrot.slane %v263_v59, 2 }
  0xea   :  { %v256_v40 = vsel %vm252_vm12, %v249_v36, 0.0 }
  0xeb   :  { %743 = vmatprep.mubr.msk.f32.mxu1 %vm252_vm12, %v244_v38  ;;  %758 = vmatprep.mubr.msk.f32.mxu0 %vm252_vm12, %v244_v38  ;;  %v253_v39 = vsel %vm252_vm12, %v244_v38, 0.0 }
  0xec   :  { %254 = vadd.xlane.f32.xlu1 %v253_v39 }
  0xf0   :  { %257 = vadd.xlane.f32.xlu1 %v256_v40 }
 0x15b   :  { %v731_v41 = vpop.f32.mrb[0].mxu0 }
 0x15c   :  { %v125_v42 = vpop.f32.mrb[1].mxu0 }
 0x179   :  { %v255_v43 = vpop.xlane.xlu1 %254 }
 0x17a   :  { %v259_v44 = vmax.f32 %v255_v43, 1.0 }
 0x17c   :  { %814 = vrsqrt.f32 %v259_v44 }
 0x17d   :  { %v258_v45 = vpop.xlane.xlu1 %257 }
 0x17e   :  { %v260_v46 = vmax.f32 %v258_v45, 1.0 }
 0x180   :  { %816 = vrsqrt.f32 %v260_v46 }
 0x186   :  { %v815_v47 = vpop.eup %814 }
 0x187   :  { %v264_v50 = vmul.f32 %v815_v47, %v125_v42 }
 0x18a   :  { %v817_v48 = vpop.eup %816 }
 0x18b   :  { %v265_v49 = vmul.f32 %v817_v48, %v731_v41 }
 0x18d   :  { %v795_v51 = vpack.c.bf16 %v265_v49, %v264_v50 }
 0x18f   :  { %796 = vmatprep.subr.bf16.mxu1 %v795_v51 }
 0x190   :  { %798 = vmatpush3.bf16.msra.mxu1 %v795_v51 }
 0x191   :  { %746 = vmatprep.subr.bf16.mxu1 %v843_v21 }
 0x193   :  { %744 = vmatmul.mubr.msk.f32.vlgmr.msra.gmra.mrb[2].mxu1 %vm252_vm12, %v249_v36 }
 0x194   :  { %747 = vmatpush3.bf16.msra.mxu1 %v808_v52  ;;  %750 = vmatprep.mubr.msk.bf16.mxu1 %vm844_vm13, %v843_v21 }
 0x195   :  { %748 = vmatprep.subr.bf16.mxu1 %v843_v21 }
 0x198   :  { %749 = vmatpush3.bf16.msra.mxu1 %v809_v53 }
 0x199   :  { %769 = vmatprep.subr.bf16.mxu1 %v843_v21 }
 0x266   :  { %v745_v54 = vpop.f32.mrb[2].mxu1 }
 0x267   :  { %v348_v55 = vmul.f32 %v817_v48, %v745_v54  ;;  %v338_v56 = vpop.f32.mrb[3].mxu1 }
 0x268   :  { %v347_v57 = vmul.f32 %v815_v47, %v338_v56 }
 0x26a   :  { %v349_v58 = vpack.c.bf16 %v348_v55, %v347_v57 }
 0x26c   :  { %751 = vmatmul.mubr.msk.bf16.vlgmr.msra.gmra.mrb[4].mxu1 %vm370_vm14, %v349_v58 }
 0x26d   :  { %773 = vmatprep.mubr.msk.bf16.mxu1 %vm844_vm13, %v843_v21  ;;  %770 = vmatpush3.bf16.msra.mxu1 %v812_v17 }
 0x26e   :  { %771 = vmatprep.subr.bf16.mxu1 %v843_v21 }
 0x271   :  { %772 = vmatpush3.bf16.msra.mxu1 %v813_v18 }
 0x33f   :  { %v408_v61 = vpop.f32.mrb[4].mxu1 }
 0x340   :  { %v409_v62 = vadd.f32 %v408_v61, %v357_v60  ;;  %v752_v63 = vpop.f32.mrb[5].mxu1 }
 0x341   :  { %v411_v0 = vpop.f32.mrb[6].mxu1 }
 0x342   :  { %v415_v1 = vmax.f32 %v409_v62, 0.0  ;;  %v412_v2 = vadd.f32 %v411_v0, %v357_v60  ;;  %v753_v3 = vpop.f32.mrb[7].mxu1 }
 0x344   :  { %v416_v4 = vmax.f32 %v412_v2, 0.0  ;;  %v417_v6 = vmul.f32 %v815_v47, %v415_v1 }
 0x346   :  { %v418_v7 = vmul.f32 %v817_v48, %v416_v4 }
 0x348   :  { %v799_v8 = vpack.c.bf16 %v418_v7, %v417_v6 }
 0x34a   :  { %800 = vmatprep.subr.bf16.mxu0 %v799_v8 }
 0x34b   :  { %802 = vmatpush3.bf16.msra.mxu0 %v799_v8 }
 0x34c   :  { %761 = vmatprep.subr.bf16.mxu0 %v843_v21 }
 0x34e   :  { %759 = vmatmul.mubr.msk.f32.vlgmr.msra.gmra.mrb[2].mxu0 %vm252_vm12, %v249_v36 }
 0x34f   :  { %762 = vmatpush3.bf16.msra.mxu0 %v810_v9  ;;  %765 = vmatprep.mubr.msk.bf16.mxu0 %vm844_vm13, %v843_v21 }
 0x350   :  { %763 = vmatprep.subr.bf16.mxu0 %v843_v21 }
 0x353   :  { %764 = vmatpush3.bf16.msra.mxu0 %v811_v10 }
 0x421   :  { %v760_v11 = vpop.f32.mrb[2].mxu0 }
 0x422   :  { %v495_v12 = vmul.f32 %v817_v48, %v760_v11  ;;  %v485_v13 = vpop.f32.mrb[3].mxu0 }
 0x423   :  { %v494_v14 = vmul.f32 %v815_v47, %v485_v13 }
 0x425   :  { %v496_v16 = vpack.c.bf16 %v495_v12, %v494_v14 }
 0x427   :  { %766 = vmatmul.mubr.msk.bf16.vlgmr.msra.gmra.mrb[4].mxu0 %vm370_vm14, %v496_v16 }
 0x4fa   :  { %v555_v20 = vpop.f32.mrb[4].mxu0 }
 0x4fb   :  { %v556_v22 = vadd.f32 %v555_v20, %v505_v19  ;;  %v767_v23 = vpop.f32.mrb[5].mxu0 }
 0x4fc   :  { %v558_v24 = vpop.f32.mrb[6].mxu0 }
 0x4fd   :  { %v562_v25 = vmax.f32 %v556_v22, 0.0  ;;  %v559_v26 = vadd.f32 %v558_v24, %v505_v19  ;;  %v768_v27 = vpop.f32.mrb[7].mxu0 }
 0x4ff   :  { %v563_v28 = vmax.f32 %v559_v26, 0.0  ;;  %v564_v29 = vsel %vm370_vm14, %v562_v25, 0.0 }
 0x501   :  { %v565_v21 = vsel %vm370_vm14, %v563_v28, 0.0 }
 0x502   :  { %v566_v30 = vadd.f32 %v565_v21, %v564_v29 }
 0x504   :  { %v567_v31 = vrot.slane %v566_v30, 4 }
 0x506   :  { %v568_v32 = vadd.f32 %v567_v31, %v566_v30 }
 0x508   :  { %v569_v33 = vrot.slane %v568_v32, 2 }
 0x50a   :  { %v570_v34 = vadd.f32 %v569_v33, %v568_v32 }
 0x50c   :  { %v571_v35 = vrot.slane %v570_v34, 1 }
 0x50e   :  { %v572_v5 = vadd.f32 %v571_v35, %v570_v34 }
 0x510   :  { %v573_v15 = vmul.f32 0.0625, %v572_v5 }
 0x512   :  { %v574_v36 = vpack.c.bf16 %v573_v15, %v573_v15 }
 0x514   :  { %774 = vmatmul.mubr.msk.bf16.vlgmr.msra.gmra.mrb[8].mxu1 %vm370_vm14, %v574_v36 }
 0x5e7   :  { %v631_v38 = vpop.f32.mrb[8].mxu1 }
 0x5e8   :  { %v632_v39 = vadd.f32 %v631_v38, %v592_v37  ;;  %v775_v40 = vpop.f32.mrb[9].mxu1 }
 0x5e9   :  { %v634_v41 = vpop.f32.mrb[10].mxu1 }
 0x5ea   :  { %v776_v42 = vpop.f32.mrb[11].mxu1  ;;  %638 = vst.msk [vmem:[#allocation2] sm:$0x1] %vm637_vm15, %v632_v39 }
 0x5eb   :  { %829 = shalt.err (!%p826_p4)
}
 0x5ec   :  { %s830_s7 = scalar_lea.hbm %s1009_s6, 16 }
 0x5ed   :  { %p831_p5 = scmp.ne.s32.totalorder %s1009_s6, %s830_s7  ;;  %p834_p6 = scmp.lt.u32.totalorder %s830_s7, %s1009_s6 }
 0x5ef   :  { %p836_p7 = pnand %p834_p6, %p831_p5 }
 0x5f1   :  { %839 = shalt.err (!%p836_p7)
}
 0x5f2   :  { %648 = dma.vmem_to_hbm [thread:$0]  %s646_s5, 16, %s1009_s6, [#allocation3]  }
 0x5f3   :  { %840 = dma.done.wait [#allocation3], 16  }
 0x5f4   :  { %841 = vsyncadd [#allocation3], 4294967280 }
 0x5f5   :  { %652 = vsyncpa [#allocation3], 1 }

</bundles_post_ra>
